<compile_context>
chip_gen: v6e
topology: v6e:2x2x1
jax: 0.10.0
libtpu: 0.0.40
codegen_flags: <defaults>
</compile_context>

<pallas_src>
import jax
import jax.numpy as jnp
from jax import lax
from jax.experimental import pallas as pl
from jax.experimental.pallas import tpu as pltpu

BN_EPS = 1e-5


def downsample_forward(x, weight, bias, gamma, beta, alpha):
    """x: (N, C, H, W) f32; weight: (2C, C, 3, 3) OIHW. Returns (N, 2C, H/2, W/2) f32."""
    n, c, h, w = x.shape
    cout = weight.shape[0]
    assert h % 2 == 0 and w % 2 == 0, "demo path assumes even spatial dims"
    ho, wo = h // 2, w // 2
    hop, wop = ho + 1, wo + 1            # polyphase spatial extents ((H+2)/2)
    howo = ho * wo
    m = n * howo                         # rows reduced over by BatchNorm

    # --- host-side layout prep (pure plumbing, no data duplication) ------------
    # reflection pad, go NHWC, split into 4 stride-2 polyphase components:
    #   xph[n*4 + p*2 + q, i, j, c] == xpad[n, 2i+p, 2j+q, c]
    xpad = jnp.pad(x, ((0, 0), (0, 0), (1, 1), (1, 1)), mode="reflect")
    xpad = xpad.transpose(0, 2, 3, 1)                              # (N, H+2, W+2, C)
    xph = xpad.reshape(n, hop, 2, wop, 2, c).transpose(0, 2, 4, 1, 3, 5)
    xph = xph.reshape(n * 4, hop, wop, c).astype(jnp.bfloat16)     # bf16 HBM traffic

    # weight taps: (kh*3+kw, Cin, Cout) in bf16 for the MXU
    w_taps = weight.transpose(2, 3, 1, 0).reshape(9, c, cout).astype(jnp.bfloat16)

    # conv bias intentionally unused: cancelled exactly by the batch-mean
    # subtraction of training-mode BatchNorm (kept in the reference below).
    del bias

    # ---------------- kernel 1: conv (3x3 tap loop) + BN statistics ------------
    # grid over batch ("arbitrary": the stats outputs are carried accumulators).
    # For large H,W this grid would additionally tile Ho; the stats pattern is
    # unchanged.
    def conv_stats_kernel(x_ref, w_ref, conv_ref, sum_ref, ssq_ref):
        b = pl.program_id(0)

        @pl.when(b == 0)
        def _init():
            sum_ref[...] = jnp.zeros_like(sum_ref)
            ssq_ref[...] = jnp.zeros_like(ssq_ref)

        acc = jnp.zeros((howo, cout), jnp.float32)
        for kh in range(3):
            for kw in range(3):
                p = (kh % 2) * 2 + (kw % 2)                        # polyphase id
                tap = x_ref[p, kh // 2:kh // 2 + ho, kw // 2:kw // 2 + wo, :]
                # upcast -> collapse (Ho,Wo,C)->(Ho*Wo,C) -> downcast: the collapse
                # is a layout no-op at f32 tiling (8-sublane tiles) but would need
                # cross-tile repacking at bf16; casts are cheap VPU ops and exact
                # (values originate from bf16), so MXU inputs stay bf16.
                tap2d = tap.astype(jnp.float32).reshape(howo, c)
                acc = acc + jnp.dot(tap2d.astype(jnp.bfloat16),
                                    w_ref[kh * 3 + kw],
                                    preferred_element_type=jnp.float32)
        acc_t = acc.T                                              # (Cout, Ho*Wo) channel-major
        conv_ref[0] = acc_t
        sum_ref[...] += jnp.sum(acc_t, axis=1, keepdims=True)      # (Cout, 1)
        ssq_ref[...] += jnp.sum(acc_t * acc_t, axis=1, keepdims=True)

    conv_t, ch_sum, ch_ssq = pl.pallas_call(
        conv_stats_kernel,
        out_shape=(
            jax.ShapeDtypeStruct((n, cout, howo), jnp.float32),    # conv result (pre-BN)
            jax.ShapeDtypeStruct((cout, 1), jnp.float32),          # per-channel sum
            jax.ShapeDtypeStruct((cout, 1), jnp.float32),          # per-channel sum of squares
        ),
        grid_spec=pltpu.PrefetchScalarGridSpec(
            num_scalar_prefetch=0,
            grid=(n,),
            in_specs=[
                pl.BlockSpec((4, hop, wop, c), lambda i: (i, 0, 0, 0)),
                pl.BlockSpec((9, c, cout), lambda i: (0, 0, 0)),
            ],
            out_specs=(
                pl.BlockSpec((1, cout, howo), lambda i: (i, 0, 0)),
                pl.BlockSpec((cout, 1), lambda i: (0, 0)),         # resident accumulator
                pl.BlockSpec((cout, 1), lambda i: (0, 0)),         # resident accumulator
            ),
        ),
        compiler_params=pltpu.CompilerParams(
            dimension_semantics=("arbitrary",),                    # carried stats accumulator
            vmem_limit_bytes=32 * 1024 * 1024,                     # fits every gen incl. v7x (64 MiB)
        ),
    )(xph, w_taps)

    # channel-major flatten for the epilogue (tiny layout plumbing between calls)
    y_t = conv_t.transpose(1, 0, 2).reshape(cout, m)

    # gamma / beta / PReLU alpha packed into one (Cout, 3) block
    params = jnp.stack(
        [gamma.astype(jnp.float32),
         beta.astype(jnp.float32),
         jnp.full((cout,), alpha, dtype=jnp.float32)], axis=1)

    # ---------------- kernel 2: BatchNorm (batch stats) + PReLU ----------------
    m_tile = 128                       # raise to 512-1024 for large N*Ho*Wo
    assert m % m_tile == 0
    inv_m = 1.0 / float(m)

    def bn_prelu_kernel(y_ref, sum_ref, ssq_ref, par_ref, o_ref):
        mean = sum_ref[...] * inv_m                                # (Cout, 1)
        var = ssq_ref[...] * inv_m - mean * mean                   # biased, as torch BN uses
        gamma_c = par_ref[:, 0:1]
        beta_c = par_ref[:, 1:2]
        alpha_c = par_ref[:, 2:3]
        scale = gamma_c * lax.rsqrt(var + BN_EPS)                  # BN folded to scale/shift
        shift = beta_c - mean * scale
        yhat = y_ref[...] * scale + shift                          # (Cout, m_tile) f32
        o_ref[...] = jnp.where(yhat > 0.0, yhat, alpha_c * yhat)   # lane-dense (Cout, 128) store

    out_t = pl.pallas_call(
        bn_prelu_kernel,
        out_shape=jax.ShapeDtypeStruct((cout, m), jnp.float32),
        grid_spec=pltpu.PrefetchScalarGridSpec(
            num_scalar_prefetch=0,
            grid=(m // m_tile,),
            in_specs=[
                pl.BlockSpec((cout, m_tile), lambda i: (0, i)),
                pl.BlockSpec((cout, 1), lambda i: (0, 0)),
                pl.BlockSpec((cout, 1), lambda i: (0, 0)),
                pl.BlockSpec((cout, 3), lambda i: (0, 0)),
            ],
            out_specs=pl.BlockSpec((cout, m_tile), lambda i: (0, i)),
        ),
        compiler_params=pltpu.CompilerParams(
            dimension_semantics=("parallel",),                     # independent tiles (v7x megacore)
            vmem_limit_bytes=32 * 1024 * 1024,
        ),
    )(y_t, ch_sum, ch_ssq, params)

    # (Cout, N*Ho*Wo) -> NCHW (free layout plumbing)
    return out_t.reshape(cout, n, ho, wo).transpose(1, 0, 2, 3)


def reference_forward(x, weight, bias, gamma, beta, alpha, mxu_bf16_inputs=True):
    """Pure-XLA reference of the PyTorch module (training-mode BatchNorm).

    mxu_bf16_inputs=True mirrors the kernel's bf16 MXU input precision so the check
    is tight; the conv bias IS applied here (the kernel drops it since batch-stat
    BN cancels it exactly).
    """
    if mxu_bf16_inputs:
        xc = x.astype(jnp.bfloat16).astype(jnp.float32)
        wc = weight.astype(jnp.bfloat16).astype(jnp.float32)
    else:
        xc, wc = x, weight
    xp = jnp.pad(xc, ((0, 0), (0, 0), (1, 1), (1, 1)), mode="reflect")
    y = lax.conv_general_dilated(
        xp, wc, window_strides=(2, 2), padding="VALID",
        dimension_numbers=("NCHW", "OIHW", "NCHW"),
        preferred_element_type=jnp.float32)
    y = y + bias.reshape(1, -1, 1, 1)
    mean = jnp.mean(y, axis=(0, 2, 3), keepdims=True)
    var = jnp.mean((y - mean) ** 2, axis=(0, 2, 3), keepdims=True)
    yhat = (y - mean) * lax.rsqrt(var + BN_EPS)
    yhat = yhat * gamma.reshape(1, -1, 1, 1) + beta.reshape(1, -1, 1, 1)
    return jnp.where(yhat > 0.0, yhat, alpha * yhat)


if __name__ == "__main__":
    N, C, H, W = 2, 4, 16, 16
    Cout = 2 * C

    key = jax.random.PRNGKey(0)
    kx, kw, kb, kg, kbe = jax.random.split(key, 5)

    x = jax.random.normal(kx, (N, C, H, W), dtype=jnp.float32)
    weight = jax.random.normal(kw, (Cout, C, 3, 3), dtype=jnp.float32) * 0.1
    bias = jax.random.normal(kb, (Cout,), dtype=jnp.float32) * 0.1
    gamma = 1.0 + 0.1 * jax.random.normal(kg, (Cout,), dtype=jnp.float32)
    beta = 0.1 * jax.random.normal(kbe, (Cout,), dtype=jnp.float32)
    alpha = jnp.float32(0.25)            # PReLU default init

    out = jax.block_until_ready(downsample_forward(x, weight, bias, gamma, beta, alpha))
    assert out.shape == (N, Cout, H // 2, W // 2), out.shape

    # tight check vs a reference using the same bf16 MXU input precision
    ref_b = jax.block_until_ready(
        reference_forward(x, weight, bias, gamma, beta, alpha, mxu_bf16_inputs=True))
    assert jnp.allclose(out, ref_b, atol=1e-3, rtol=1e-3), float(jnp.max(jnp.abs(out - ref_b)))

    # loose sanity check vs pure-f32 module semantics (difference = bf16 input rounding only)
    ref_f = jax.block_until_ready(
        reference_forward(x, weight, bias, gamma, beta, alpha, mxu_bf16_inputs=False))
    assert jnp.allclose(out, ref_f, atol=1e-1, rtol=1e-1), float(jnp.max(jnp.abs(out - ref_f)))

    print("KERNEL_OK")
</pallas_src>

<mosaic_0001>
module attributes {stable_mosaic.version = 11 : i64} {
  func.func @conv_stats_kernel(%arg0: i32, %arg1: memref<4x9x9x4xbf16, #tpu.memory_space<vmem>>, %arg2: memref<9x4x8xbf16, #tpu.memory_space<vmem>>, %arg3: memref<1x8x64xf32, #tpu.memory_space<vmem>>, %arg4: memref<8x1xf32, #tpu.memory_space<vmem>>, %arg5: memref<8x1xf32, #tpu.memory_space<vmem>>) attributes {dimension_semantics = [#tpu.dimension_semantics<arbitrary>], iteration_bounds = array<i64: 2>, scalar_prefetch = 0 : i64, scratch_operands = 0 : i64, tpu.core_type = #tpu.core_type<tc>, window_params = [{transform_indices = @transform_0, window_bounds = array<i64: 4, 9, 9, 4>}, {pipeline_mode = #tpu.pipeline_mode<synchronous>, transform_indices = @transform_1, window_bounds = array<i64: 9, 4, 8>}, {transform_indices = @transform_2, window_bounds = array<i64: 1, 8, 64>}, {pipeline_mode = #tpu.pipeline_mode<synchronous>, transform_indices = @transform_3, window_bounds = array<i64: 8, 1>}, {pipeline_mode = #tpu.pipeline_mode<synchronous>, transform_indices = @transform_4, window_bounds = array<i64: 8, 1>}]} {
    %c0_i32 = arith.constant 0 : i32
    %0 = arith.cmpi eq, %arg0, %c0_i32 : i32
    %1 = arith.extui %0 : i1 to i32
    %c0_i32_0 = arith.constant 0 : i32
    %2 = arith.cmpi ne, %1, %c0_i32_0 : i32
    scf.if %2 {
      %cst_77 = arith.constant 0.000000e+00 : f32
      %100 = vector.broadcast %cst_77 : f32 to vector<8x1xf32>
      %c0_78 = arith.constant 0 : index
      %c0_79 = arith.constant 0 : index
      %101 = vector.load %arg4[%c0_78, %c0_79] : memref<8x1xf32, #tpu.memory_space<vmem>>, vector<8x1xf32>
      tpu.vector_store %arg4[%c0_78, %c0_79], %100 {strides = array<i32>} : memref<8x1xf32, #tpu.memory_space<vmem>>, vector<8x1xf32>,
      %cst_80 = arith.constant 0.000000e+00 : f32
      %102 = vector.broadcast %cst_80 : f32 to vector<8x1xf32>
      %c0_81 = arith.constant 0 : index
      %c0_82 = arith.constant 0 : index
      %103 = vector.load %arg5[%c0_81, %c0_82] : memref<8x1xf32, #tpu.memory_space<vmem>>, vector<8x1xf32>
      tpu.vector_store %arg5[%c0_81, %c0_82], %102 {strides = array<i32>} : memref<8x1xf32, #tpu.memory_space<vmem>>, vector<8x1xf32>,
    } else {
    }
    %cst = arith.constant 0.000000e+00 : f32
    %3 = vector.broadcast %cst : f32 to vector<64x8xf32>
    %c0 = arith.constant 0 : index
    %c0_1 = arith.constant 0 : index
    %c0_2 = arith.constant 0 : index
    %c0_3 = arith.constant 0 : index
    %4 = vector.load %arg1[%c0, %c0_1, %c0_2, %c0_3] : memref<4x9x9x4xbf16, #tpu.memory_space<vmem>>, vector<1x8x8x4xbf16>
    %5 = vector.shape_cast %4 : vector<1x8x8x4xbf16> to vector<8x8x4xbf16>
    %6 = arith.extf %5 : vector<8x8x4xbf16> to vector<8x8x4xf32>
    %7 = vector.shape_cast %6 : vector<8x8x4xf32> to vector<64x4xf32>
    %8 = arith.truncf %7 : vector<64x4xf32> to vector<64x4xbf16>
    %c0_4 = arith.constant 0 : index
    %c0_5 = arith.constant 0 : index
    %c0_6 = arith.constant 0 : index
    %9 = vector.load %arg2[%c0_4, %c0_5, %c0_6] : memref<9x4x8xbf16, #tpu.memory_space<vmem>>, vector<1x4x8xbf16>
    %10 = vector.shape_cast %9 : vector<1x4x8xbf16> to vector<4x8xbf16>
    %cst_7 = arith.constant dense<0.000000e+00> : vector<64x8xf32>
    %11 = tpu.matmul %8, %10, %cst_7 {dimension_numbers = #tpu.dot_dimension_numbers<[1], [0], [0], [1], [0, 0, 1, 1], [], []>} : vector<64x4xbf16>, vector<4x8xbf16>, vector<64x8xf32> -> vector<64x8xf32>
    %12 = arith.addf %3, %11 : vector<64x8xf32>
    %c1 = arith.constant 1 : index
    %c0_8 = arith.constant 0 : index
    %c0_9 = arith.constant 0 : index
    %c0_10 = arith.constant 0 : index
    %13 = vector.load %arg1[%c1, %c0_8, %c0_9, %c0_10] : memref<4x9x9x4xbf16, #tpu.memory_space<vmem>>, vector<1x8x8x4xbf16>
    %14 = vector.shape_cast %13 : vector<1x8x8x4xbf16> to vector<8x8x4xbf16>
    %15 = arith.extf %14 : vector<8x8x4xbf16> to vector<8x8x4xf32>
    %16 = vector.shape_cast %15 : vector<8x8x4xf32> to vector<64x4xf32>
    %17 = arith.truncf %16 : vector<64x4xf32> to vector<64x4xbf16>
    %c1_11 = arith.constant 1 : index
    %c0_12 = arith.constant 0 : index
    %c0_13 = arith.constant 0 : index
    %18 = vector.load %arg2[%c1_11, %c0_12, %c0_13] : memref<9x4x8xbf16, #tpu.memory_space<vmem>>, vector<1x4x8xbf16>
    %19 = vector.shape_cast %18 : vector<1x4x8xbf16> to vector<4x8xbf16>
    %cst_14 = arith.constant dense<0.000000e+00> : vector<64x8xf32>
    %20 = tpu.matmul %17, %19, %cst_14 {dimension_numbers = #tpu.dot_dimension_numbers<[1], [0], [0], [1], [0, 0, 1, 1], [], []>} : vector<64x4xbf16>, vector<4x8xbf16>, vector<64x8xf32> -> vector<64x8xf32>
    %21 = arith.addf %12, %20 : vector<64x8xf32>
    %c0_15 = arith.constant 0 : index
    %c0_16 = arith.constant 0 : index
    %c1_17 = arith.constant 1 : index
    %c0_18 = arith.constant 0 : index
    %22 = vector.load %arg1[%c0_15, %c0_16, %c1_17, %c0_18] : memref<4x9x9x4xbf16, #tpu.memory_space<vmem>>, vector<1x8x8x4xbf16>
    %23 = vector.shape_cast %22 : vector<1x8x8x4xbf16> to vector<8x8x4xbf16>
    %24 = arith.extf %23 : vector<8x8x4xbf16> to vector<8x8x4xf32>
    %25 = vector.shape_cast %24 : vector<8x8x4xf32> to vector<64x4xf32>
    %26 = arith.truncf %25 : vector<64x4xf32> to vector<64x4xbf16>
    %c2 = arith.constant 2 : index
    %c0_19 = arith.constant 0 : index
    %c0_20 = arith.constant 0 : index
    %27 = vector.load %arg2[%c2, %c0_19, %c0_20] : memref<9x4x8xbf16, #tpu.memory_space<vmem>>, vector<1x4x8xbf16>
    %28 = vector.shape_cast %27 : vector<1x4x8xbf16> to vector<4x8xbf16>
    %cst_21 = arith.constant dense<0.000000e+00> : vector<64x8xf32>
    %29 = tpu.matmul %26, %28, %cst_21 {dimension_numbers = #tpu.dot_dimension_numbers<[1], [0], [0], [1], [0, 0, 1, 1], [], []>} : vector<64x4xbf16>, vector<4x8xbf16>, vector<64x8xf32> -> vector<64x8xf32>
    %30 = arith.addf %21, %29 : vector<64x8xf32>
    %c2_22 = arith.constant 2 : index
    %c0_23 = arith.constant 0 : index
    %c0_24 = arith.constant 0 : index
    %c0_25 = arith.constant 0 : index
    %31 = vector.load %arg1[%c2_22, %c0_23, %c0_24, %c0_25] : memref<4x9x9x4xbf16, #tpu.memory_space<vmem>>, vector<1x8x8x4xbf16>
    %32 = vector.shape_cast %31 : vector<1x8x8x4xbf16> to vector<8x8x4xbf16>
    %33 = arith.extf %32 : vector<8x8x4xbf16> to vector<8x8x4xf32>
    %34 = vector.shape_cast %33 : vector<8x8x4xf32> to vector<64x4xf32>
    %35 = arith.truncf %34 : vector<64x4xf32> to vector<64x4xbf16>
    %c3 = arith.constant 3 : index
    %c0_26 = arith.constant 0 : index
    %c0_27 = arith.constant 0 : index
    %36 = vector.load %arg2[%c3, %c0_26, %c0_27] : memref<9x4x8xbf16, #tpu.memory_space<vmem>>, vector<1x4x8xbf16>
    %37 = vector.shape_cast %36 : vector<1x4x8xbf16> to vector<4x8xbf16>
    %cst_28 = arith.constant dense<0.000000e+00> : vector<64x8xf32>
    %38 = tpu.matmul %35, %37, %cst_28 {dimension_numbers = #tpu.dot_dimension_numbers<[1], [0], [0], [1], [0, 0, 1, 1], [], []>} : vector<64x4xbf16>, vector<4x8xbf16>, vector<64x8xf32> -> vector<64x8xf32>
    %39 = arith.addf %30, %38 : vector<64x8xf32>
    %c3_29 = arith.constant 3 : index
    %c0_30 = arith.constant 0 : index
    %c0_31 = arith.constant 0 : index
    %c0_32 = arith.constant 0 : index
    %40 = vector.load %arg1[%c3_29, %c0_30, %c0_31, %c0_32] : memref<4x9x9x4xbf16, #tpu.memory_space<vmem>>, vector<1x8x8x4xbf16>
    %41 = vector.shape_cast %40 : vector<1x8x8x4xbf16> to vector<8x8x4xbf16>
    %42 = arith.extf %41 : vector<8x8x4xbf16> to vector<8x8x4xf32>
    %43 = vector.shape_cast %42 : vector<8x8x4xf32> to vector<64x4xf32>
    %44 = arith.truncf %43 : vector<64x4xf32> to vector<64x4xbf16>
    %c4 = arith.constant 4 : index
    %c0_33 = arith.constant 0 : index
    %c0_34 = arith.constant 0 : index
    %45 = vector.load %arg2[%c4, %c0_33, %c0_34] : memref<9x4x8xbf16, #tpu.memory_space<vmem>>, vector<1x4x8xbf16>
    %46 = vector.shape_cast %45 : vector<1x4x8xbf16> to vector<4x8xbf16>
    %cst_35 = arith.constant dense<0.000000e+00> : vector<64x8xf32>
    %47 = tpu.matmul %44, %46, %cst_35 {dimension_numbers = #tpu.dot_dimension_numbers<[1], [0], [0], [1], [0, 0, 1, 1], [], []>} : vector<64x4xbf16>, vector<4x8xbf16>, vector<64x8xf32> -> vector<64x8xf32>
    %48 = arith.addf %39, %47 : vector<64x8xf32>
    %c2_36 = arith.constant 2 : index
    %c0_37 = arith.constant 0 : index
    %c1_38 = arith.constant 1 : index
    %c0_39 = arith.constant 0 : index
    %49 = vector.load %arg1[%c2_36, %c0_37, %c1_38, %c0_39] : memref<4x9x9x4xbf16, #tpu.memory_space<vmem>>, vector<1x8x8x4xbf16>
    %50 = vector.shape_cast %49 : vector<1x8x8x4xbf16> to vector<8x8x4xbf16>
    %51 = arith.extf %50 : vector<8x8x4xbf16> to vector<8x8x4xf32>
    %52 = vector.shape_cast %51 : vector<8x8x4xf32> to vector<64x4xf32>
    %53 = arith.truncf %52 : vector<64x4xf32> to vector<64x4xbf16>
    %c5 = arith.constant 5 : index
    %c0_40 = arith.constant 0 : index
    %c0_41 = arith.constant 0 : index
    %54 = vector.load %arg2[%c5, %c0_40, %c0_41] : memref<9x4x8xbf16, #tpu.memory_space<vmem>>, vector<1x4x8xbf16>
    %55 = vector.shape_cast %54 : vector<1x4x8xbf16> to vector<4x8xbf16>
    %cst_42 = arith.constant dense<0.000000e+00> : vector<64x8xf32>
    %56 = tpu.matmul %53, %55, %cst_42 {dimension_numbers = #tpu.dot_dimension_numbers<[1], [0], [0], [1], [0, 0, 1, 1], [], []>} : vector<64x4xbf16>, vector<4x8xbf16>, vector<64x8xf32> -> vector<64x8xf32>
    %57 = arith.addf %48, %56 : vector<64x8xf32>
    %c0_43 = arith.constant 0 : index
    %c1_44 = arith.constant 1 : index
    %c0_45 = arith.constant 0 : index
    %c0_46 = arith.constant 0 : index
    %58 = vector.load %arg1[%c0_43, %c1_44, %c0_45, %c0_46] : memref<4x9x9x4xbf16, #tpu.memory_space<vmem>>, vector<1x8x8x4xbf16>
    %59 = vector.shape_cast %58 : vector<1x8x8x4xbf16> to vector<8x8x4xbf16>
    %60 = arith.extf %59 : vector<8x8x4xbf16> to vector<8x8x4xf32>
    %61 = vector.shape_cast %60 : vector<8x8x4xf32> to vector<64x4xf32>
    %62 = arith.truncf %61 : vector<64x4xf32> to vector<64x4xbf16>
    %c6 = arith.constant 6 : index
    %c0_47 = arith.constant 0 : index
    %c0_48 = arith.constant 0 : index
    %63 = vector.load %arg2[%c6, %c0_47, %c0_48] : memref<9x4x8xbf16, #tpu.memory_space<vmem>>, vector<1x4x8xbf16>
    %64 = vector.shape_cast %63 : vector<1x4x8xbf16> to vector<4x8xbf16>
    %cst_49 = arith.constant dense<0.000000e+00> : vector<64x8xf32>
    %65 = tpu.matmul %62, %64, %cst_49 {dimension_numbers = #tpu.dot_dimension_numbers<[1], [0], [0], [1], [0, 0, 1, 1], [], []>} : vector<64x4xbf16>, vector<4x8xbf16>, vector<64x8xf32> -> vector<64x8xf32>
    %66 = arith.addf %57, %65 : vector<64x8xf32>
    %c1_50 = arith.constant 1 : index
    %c1_51 = arith.constant 1 : index
    %c0_52 = arith.constant 0 : index
    %c0_53 = arith.constant 0 : index
    %67 = vector.load %arg1[%c1_50, %c1_51, %c0_52, %c0_53] : memref<4x9x9x4xbf16, #tpu.memory_space<vmem>>, vector<1x8x8x4xbf16>
    %68 = vector.shape_cast %67 : vector<1x8x8x4xbf16> to vector<8x8x4xbf16>
    %69 = arith.extf %68 : vector<8x8x4xbf16> to vector<8x8x4xf32>
    %70 = vector.shape_cast %69 : vector<8x8x4xf32> to vector<64x4xf32>
    %71 = arith.truncf %70 : vector<64x4xf32> to vector<64x4xbf16>
    %c7 = arith.constant 7 : index
    %c0_54 = arith.constant 0 : index
    %c0_55 = arith.constant 0 : index
    %72 = vector.load %arg2[%c7, %c0_54, %c0_55] : memref<9x4x8xbf16, #tpu.memory_space<vmem>>, vector<1x4x8xbf16>
    %73 = vector.shape_cast %72 : vector<1x4x8xbf16> to vector<4x8xbf16>
    %cst_56 = arith.constant dense<0.000000e+00> : vector<64x8xf32>
    %74 = tpu.matmul %71, %73, %cst_56 {dimension_numbers = #tpu.dot_dimension_numbers<[1], [0], [0], [1], [0, 0, 1, 1], [], []>} : vector<64x4xbf16>, vector<4x8xbf16>, vector<64x8xf32> -> vector<64x8xf32>
    %75 = arith.addf %66, %74 : vector<64x8xf32>
    %c0_57 = arith.constant 0 : index
    %c1_58 = arith.constant 1 : index
    %c1_59 = arith.constant 1 : index
    %c0_60 = arith.constant 0 : index
    %76 = vector.load %arg1[%c0_57, %c1_58, %c1_59, %c0_60] : memref<4x9x9x4xbf16, #tpu.memory_space<vmem>>, vector<1x8x8x4xbf16>
    %77 = vector.shape_cast %76 : vector<1x8x8x4xbf16> to vector<8x8x4xbf16>
    %78 = arith.extf %77 : vector<8x8x4xbf16> to vector<8x8x4xf32>
    %79 = vector.shape_cast %78 : vector<8x8x4xf32> to vector<64x4xf32>
    %80 = arith.truncf %79 : vector<64x4xf32> to vector<64x4xbf16>
    %c8 = arith.constant 8 : index
    %c0_61 = arith.constant 0 : index
    %c0_62 = arith.constant 0 : index
    %81 = vector.load %arg2[%c8, %c0_61, %c0_62] : memref<9x4x8xbf16, #tpu.memory_space<vmem>>, vector<1x4x8xbf16>
    %82 = vector.shape_cast %81 : vector<1x4x8xbf16> to vector<4x8xbf16>
    %cst_63 = arith.constant dense<0.000000e+00> : vector<64x8xf32>
    %83 = tpu.matmul %80, %82, %cst_63 {dimension_numbers = #tpu.dot_dimension_numbers<[1], [0], [0], [1], [0, 0, 1, 1], [], []>} : vector<64x4xbf16>, vector<4x8xbf16>, vector<64x8xf32> -> vector<64x8xf32>
    %84 = arith.addf %75, %83 : vector<64x8xf32>
    %85 = tpu.transpose %84, [1, 0] : vector<64x8xf32> -> vector<8x64xf32>
    %c0_64 = arith.constant 0 : index
    %c0_65 = arith.constant 0 : index
    %c0_66 = arith.constant 0 : index
    %86 = vector.load %arg3[%c0_64, %c0_65, %c0_66] : memref<1x8x64xf32, #tpu.memory_space<vmem>>, vector<1x8x64xf32>
    %87 = vector.shape_cast %86 : vector<1x8x64xf32> to vector<8x64xf32>
    %88 = vector.shape_cast %85 : vector<8x64xf32> to vector<1x8x64xf32>
    tpu.vector_store %arg3[%c0_64, %c0_65, %c0_66], %88 {strides = array<i32>} : memref<1x8x64xf32, #tpu.memory_space<vmem>>, vector<1x8x64xf32>,
    %c0_67 = arith.constant 0 : index
    %c0_68 = arith.constant 0 : index
    %89 = vector.load %arg4[%c0_67, %c0_68] : memref<8x1xf32, #tpu.memory_space<vmem>>, vector<8x1xf32>
    %cst_69 = arith.constant dense<0.000000e+00> : vector<8xf32>
    %90 = vector.multi_reduction <add>, %85, %cst_69 [1] : vector<8x64xf32> to vector<8xf32>
    %91 = vector.shape_cast %90 : vector<8xf32> to vector<8x1xf32>
    %92 = arith.addf %89, %91 : vector<8x1xf32>
    %c0_70 = arith.constant 0 : index
    %c0_71 = arith.constant 0 : index
    %93 = vector.load %arg4[%c0_70, %c0_71] : memref<8x1xf32, #tpu.memory_space<vmem>>, vector<8x1xf32>
    tpu.vector_store %arg4[%c0_70, %c0_71], %92 {strides = array<i32>} : memref<8x1xf32, #tpu.memory_space<vmem>>, vector<8x1xf32>,
    %c0_72 = arith.constant 0 : index
    %c0_73 = arith.constant 0 : index
    %94 = vector.load %arg5[%c0_72, %c0_73] : memref<8x1xf32, #tpu.memory_space<vmem>>, vector<8x1xf32>
    %95 = arith.mulf %85, %85 : vector<8x64xf32>
    %cst_74 = arith.constant dense<0.000000e+00> : vector<8xf32>
    %96 = vector.multi_reduction <add>, %95, %cst_74 [1] : vector<8x64xf32> to vector<8xf32>
    %97 = vector.shape_cast %96 : vector<8xf32> to vector<8x1xf32>
    %98 = arith.addf %94, %97 : vector<8x1xf32>
    %c0_75 = arith.constant 0 : index
    %c0_76 = arith.constant 0 : index
    %99 = vector.load %arg5[%c0_75, %c0_76] : memref<8x1xf32, #tpu.memory_space<vmem>>, vector<8x1xf32>
    tpu.vector_store %arg5[%c0_75, %c0_76], %98 {strides = array<i32>} : memref<8x1xf32, #tpu.memory_space<vmem>>, vector<8x1xf32>,
    return
  }
  func.func @transform_0(%arg0: i32) -> (i32, i32, i32, i32) {
    %c0_i32 = arith.constant 0 : i32
    %c0_i32_0 = arith.constant 0 : i32
    %c0_i32_1 = arith.constant 0 : i32
    %c0_i32_2 = arith.constant 0 : i32
    return %arg0, %c0_i32, %c0_i32_0, %c0_i32_1 : i32, i32, i32, i32
  }
  func.func @transform_1(%arg0: i32) -> (i32, i32, i32) {
    %c0_i32 = arith.constant 0 : i32
    %c0_i32_0 = arith.constant 0 : i32
    %c0_i32_1 = arith.constant 0 : i32
    %c0_i32_2 = arith.constant 0 : i32
    return %c0_i32, %c0_i32_0, %c0_i32_1 : i32, i32, i32
  }
  func.func @transform_2(%arg0: i32) -> (i32, i32, i32) {
    %c0_i32 = arith.constant 0 : i32
    %c0_i32_0 = arith.constant 0 : i32
    %c0_i32_1 = arith.constant 0 : i32
    return %arg0, %c0_i32, %c0_i32_0 : i32, i32, i32
  }
  func.func @transform_3(%arg0: i32) -> (i32, i32) {
    %c0_i32 = arith.constant 0 : i32
    %c0_i32_0 = arith.constant 0 : i32
    %c0_i32_1 = arith.constant 0 : i32
    return %c0_i32, %c0_i32_0 : i32, i32
  }
  func.func @transform_4(%arg0: i32) -> (i32, i32) {
    %c0_i32 = arith.constant 0 : i32
    %c0_i32_0 = arith.constant 0 : i32
    %c0_i32_1 = arith.constant 0 : i32
    return %c0_i32, %c0_i32_0 : i32, i32
  }
}

</mosaic_0001>

<bundles_post_ra>
// kernel: tpu_custom_call.1
= control target key start
LH: loop header
LB: loop body
LE: loop exit
PB: predicated region body
PF: predicated region fallthrough
CT: control target
= control target key end

     0   :  { %10 = vsyncpa [#allocation3], 0  ;;  %s2305_s0 = inlined_call_operand.vmem [shape: bf16[8,9,9,4], index: 0, kind: input, shape index: {}]   ;;  %s2306_s1 = inlined_call_operand.vmem [shape: bf16[9,4,8], index: 1, kind: input, shape index: {}]   ;;  %s2307_s2 = inlined_call_operand.hbm [shape: f32[2,8,64], index: 2, kind: output, shape index: {0}]   ;;  %s2308_s3 = inlined_call_operand.vmem [shape: f32[8,1], index: 3, kind: output, shape index: {1}]   ;;  %s2309_s4 = inlined_call_operand.vmem [shape: f32[8,1], index: 4, kind: output, shape index: {2}]  }
   0x1   :  { %12 = vsyncpa [#allocation3 + $0x1], 0  ;;  %s1964_s15 = smov 0   ;;  %s1966_s16 = smov 0  }
   0x2   :  { %s1968_s17 = smov 0   ;;  %s1970_s18 = smov 0  }
   0x3 LB: > { %s1985_s19 = sadd.s32 4294967295, %s1935_s18   ;;  %s1510_s20 = sadd.s32 4294967294, %s1935_s18   ;;  %s1935_s18 = sphi %s1970_s18, %s2315_s18   ;;  %s1931_s17 = sphi %s1968_s17, %s2314_s17   ;;  %s1927_s16 = sphi %s1966_s16, %s2313_s16   ;;  %s1923_s15 = sphi %s1964_s15, %s2312_s15  }
   0x4   : > { %s1989_s21 = sadd.s32 1, %s1935_s18   ;;  %s72_s22 = sadd.s32 1, %s1931_s17 }
   0x5   : > { %s69_s23 = ssub.s32 %s1935_s18, %s1989_s21  ;;  %p82_p0 = scmp.ne.s32.totalorder %s1931_s17, %s1927_s16 }
   0x6   : > { %p70_p1 = scmp.eq.s32.totalorder %s69_s23, 0  ;;  %p83_p2 = scmp.eq.s32.totalorder %s1985_s19, 1 }
   0x7   : > { %p88_p3 = scmp.ne.s32.totalorder %s1927_s16, %s1923_s15  ;;  %p89_p4 = scmp.eq.s32.totalorder %s1510_s20, 1 }
   0x8   : > { %s2000_s24 = scalar_select %p70_p1, %s1931_s17, %s72_s22  }
   0x9   : > { %p2002_p5 = por %p83_p2, %p82_p0  ;;  %p2006_p6 = por %p89_p4, %p88_p3 }
   0xa   : > { %p1513_p7 = scmp.ge.s32.totalorder %s1935_s18, 1  ;;  %p162_p8 = scmp.lt.s32.totalorder %s1935_s18, 3 }
   0xc   : > { %p163_p9 = pnand %p1513_p7, %p162_p8 }
   0xd   : > { %s182_s27 = sand.u32 (!%p163_p9), 1, %s1927_s16   ;;  %s1515_s28 = sshll.u32 (!%p163_p9), %s1985_s19, 2 }
   0xe   : > { %166 = sbr.rel (%p163_p9) target bundleno = 557 (0x22d), region = 28  ;;  %s2016_s29 = sshll.u32 (!%p163_p9), %s182_s27, 3 }
   0xf   : > { %p190_p10 = scmp.lt.s32.totalorder (!%p163_p9), %s1515_s28, 7  ;;  %s184_s8 = scalar_lea.vmem (!%p163_p9), [#allocation2], %s2016_s29 }
  0x10   : > { %p1517_p11 = scmp.ne.s32.totalorder (!%p163_p9), %s1985_s19, 0 }
  0x13   : > { %s2317_s28 = smov (!%p190_p10, %s1515_s28), 7  ;;  %200 = sbr.rel (%p1517_p11) target bundleno = 26 (0x1a), region = 32 }
  0x14   : > { %s1809_s30 = smul.u32 72, %s2317_s28 }
  0x16   : > { %s2021_s7 = scalar_lea.vmem %s2305_s0, %s1809_s30 }
  0x18   : > { %vm201_vm0 = vcmask 7168   ;;  %v1937_v0 = vmov 0.0  }
  0x19   : > { %202 = vst.msk [vmem:[%s2308_s3] sm:$0xff] %vm201_vm0, %v1937_v0  ;;  %203 = vst.msk [vmem:[%s2309_s4] sm:$0xff] %vm201_vm0, %v1937_v0 }
  0x1a PF: > { %v1534_v1 = vld [vmem:[%s2306_s1 + $0x2] sm:$0x3]  ;;  %vm261_vm1 = vcmask 1041408   ;;  %vm248_vm2 = vcmask 31744   ;;  %v1851_v3 = vld [vmem:[%s2021_s7 + $0x48] ss:$8 sps:$4 sm:$0xff]  }
  0x1b   : > { %1799 = vmatprep.subr.msk.bf16.mxu0 %vm261_vm1, %v1534_v1  ;;  %1800 = vmatprep.subr.msk.bf16.mxu1 %vm261_vm1, %v1534_v1  ;;  %v263_v2 = vsel %vm261_vm1, %v1534_v1, 0  ;;  %vm458_vm3 = vcmask 1046528   ;;  %v1852_v4 = vld [vmem:[%s2021_s7 + $0x68] ss:$8 sps:$4 sm:$0xff]   ;;  %v1853_v5 = vld [vmem:[%s2021_s7 + $0x58] ss:$8 sps:$4 sm:$0xff]  }
  0x1c   : > { %1708 = vmatpush3.bf16.msra.mxu0 %v263_v2  ;;  %1798 = vmatpush3.bf16.msra.mxu1 %v263_v2  ;;  %v1854_v6 = vld [vmem:[%s2021_s7 + $0x78] ss:$8 sps:$4 sm:$0xff]   ;;  %v1543_v8 = vld [vmem:[%s2306_s1 + $0x4] sm:$0x3]  ;;  %v413_v14 = vld [vmem:[%s2021_s7 + $0xc] sm:$0x1] }
  0x1d   : > { %1709 = vmatprep.mubr.msk.bf16.mxu0 %vm248_vm2, %v1851_v3  ;;  %1713 = vmatprep.mubr.msk.bf16.mxu1 %vm248_vm2, %v1852_v4  ;;  %v224_v7 = vld [vmem:[%s2306_s1] sm:$0x3]  ;;  %v510_v10 = vsel %vm261_vm1, %v1543_v8, 0  ;;  %v411_v13 = vld [vmem:[%s2021_s7 + $0x4] sm:$0x1]  ;;  %v429_v18 = vunpack.c.l.bf16 %v413_v14  ;;  %vm1409_vm4 = vcmask 523264  }
  0x1e   : > { %1801 = vmatprep.subr.msk.bf16.mxu1 %vm261_vm1, %v224_v7  ;;  %v343_v9 = vsel %vm261_vm1, %v224_v7, 0  ;;  %v1855_v11 = vld [vmem:[%s2021_s7] ss:$8 sps:$4 sm:$0xff]   ;;  %1802 = vmatprep.subr.msk.bf16.mxu0 %vm261_vm1, %v1543_v8  ;;  %v427_v16 = vunpack.c.l.bf16 %v411_v13  ;;  %v1856_v19 = vld [vmem:[%s2021_s7 + $0x10] ss:$8 sps:$4 sm:$0xff]   ;;  %s1439_s6 = sshll.u32 %s184_s8, 4  ;;  %s1440_s6 = int_to_ptr.vmem [resolvable:$true] %s1439_s6 }
  0x1f   : > { %1710 = vmatmul.mubr.msk.bf16.vlgmr.msra.gmra.mxu0 %vm248_vm2, %v1853_v5  ;;  %1714 = vmatmul.mubr.msk.bf16.vlgmr.msra.gmra.mxu1 %vm248_vm2, %v1854_v6  ;;  %v410_v12 = vld [vmem:[%s2021_s7] ss:$8 sps:$4 sm:$0xff]   ;;  %v414_v20 = vld [vmem:[%s2021_s7 + $0x10] ss:$8 sps:$4 sm:$0xff]   ;;  %v415_v21 = vld [vmem:[%s2021_s7 + $0x14] sm:$0x1] }
  0x20   : > { %1718 = vmatpush3.bf16.msra.mxu1 %v343_v9  ;;  %1728 = vmatpush3.bf16.msra.mxu0 %v510_v10  ;;  %v426_v15 = vunpack.c.l.bf16 %v410_v12  ;;  %v428_v17 = vunpack.c.h.bf16 %v410_v12  ;;  %v417_v22 = vld [vmem:[%s2021_s7 + $0x1c] sm:$0x1]  ;;  %v460_v24 = vrot.slane %v427_v16, 1  ;;  %v463_v26 = vrot.slane %v429_v18, 1  ;;  %v1560_v27 = vld [vmem:[%s2306_s1 + $0x6] sm:$0x3] }
  0x21   : > { %1719 = vmatprep.mubr.msk.bf16.mxu1 %vm248_vm2, %v1855_v11  ;;  %v430_v28 = vunpack.c.l.bf16 %v414_v20  ;;  %v431_v29 = vunpack.c.l.bf16 %v415_v21  ;;  %v432_v30 = vunpack.c.h.bf16 %v414_v20  ;;  %v433_v31 = vunpack.c.l.bf16 %v417_v22  ;;  %1803 = vmatprep.subr.msk.bf16.mxu1 %vm261_vm1, %v1560_v27  ;;  %v1577_v32 = vld [vmem:[%s2306_s1 + $0x8] sm:$0x3]  ;;  %v419_v42 = vld [vmem:[%s2021_s7 + $0x24] sm:$0x1]  ;;  %v421_v44 = vld [vmem:[%s2021_s7 + $0x2c] sm:$0x1] }
  0x22   : > { %v459_v23 = vrot.slane %v426_v15, 1  ;;  %v462_v25 = vrot.slane %v428_v17, 1  ;;  %v621_v35 = vsel %vm261_vm1, %v1560_v27, 0  ;;  %1804 = vmatprep.subr.msk.bf16.mxu0 %vm261_vm1, %v1577_v32  ;;  %v1857_v36 = vld [vmem:[%s2021_s7 + $0x20] ss:$8 sps:$4 sm:$0xff]   ;;  %v435_v46 = vunpack.c.l.bf16 %v419_v42  ;;  %s1426_s9 = scalar_lea.sflag [#allocation3], %s182_s27 }
  0x23   : > { %v418_v37 = vld [vmem:[%s2021_s7 + $0x20] ss:$8 sps:$4 sm:$0xff]   ;;  %v465_v39 = vrot.slane %v430_v28, 1  ;;  %v466_v40 = vrot.slane %v431_v29, 1  ;;  %v468_v41 = vrot.slane %v432_v30, 1  ;;  %v469_v43 = vrot.slane %v433_v31, 1 }
  0x24   : > { %v461_v33 = vsel %vm458_vm3, %v459_v23, %v460_v24  ;;  %v464_v34 = vsel %vm458_vm3, %v462_v25, %v463_v26  ;;  %v434_v45 = vunpack.c.l.bf16 %v418_v37  ;;  %v436_v47 = vunpack.c.h.bf16 %v418_v37  ;;  %v422_v51 = vld [vmem:[%s2021_s7 + $0x30] ss:$8 sps:$4 sm:$0xff]   ;;  %v423_v56 = vld [vmem:[%s2021_s7 + $0x34] sm:$0x1]  ;;  %v425_v59 = vld [vmem:[%s2021_s7 + $0x3c] sm:$0x1] }
  0x25   : > { %v491_v38 = vpack.c.bf16 %v464_v34, %v461_v33  ;;  %v467_v48 = vsel %vm458_vm3, %v465_v39, %v466_v40  ;;  %v732_v49 = vsel %vm261_vm1, %v1577_v32, 0  ;;  %v437_v50 = vunpack.c.l.bf16 %v421_v44  ;;  %v1858_v63 = vld [vmem:[%s2021_s7 + $0x30] ss:$8 sps:$4 sm:$0xff]   ;;  %v1598_v11 = vld [vmem:[%s2306_s1 + $0xa] sm:$0x3]  ;;  %s1875_s10 = scalar_lea.vmem %s1440_s6, 128 }
  0x26   : > { %v470_v52 = vsel %vm458_vm3, %v468_v41, %v469_v43  ;;  %v471_v53 = vrot.slane %v434_v45, 1  ;;  %v472_v54 = vrot.slane %v435_v46, 1  ;;  %v474_v55 = vrot.slane %v436_v47, 1  ;;  %v1859_v5 = vld [vmem:[%s2021_s7 + $0x90] ss:$8 sps:$4 sm:$0xff]   ;;  %p1876_p12 = scmp.ne.s32.totalorder %s1440_s6, %s1875_s10  ;;  %s1938_s11 = smov [#allocation2]  }
  0x27   : > { %1720 = vmatmul.mubr.msk.bf16.vlgmr.msra.gmra.mxu1 %vm248_vm2, %v1856_v19  ;;  %1729 = vmatprep.mubr.msk.bf16.mxu0 %vm248_vm2, %v491_v38  ;;  %v492_v57 = vpack.c.bf16 %v470_v52, %v467_v48  ;;  %v475_v58 = vrot.slane %v437_v50, 1  ;;  %v438_v60 = vunpack.c.l.bf16 %v422_v51  ;;  %v439_v61 = vunpack.c.l.bf16 %v423_v56  ;;  %v1615_v12 = vld [vmem:[%s2306_s1 + $0xc] sm:$0x3]  ;;  %v1860_v14 = vld [vmem:[%s2021_s7 + $0xd8] ss:$8 sps:$4 sm:$0xff]   ;;  %s1879_s12 = sshll.u32 %s1938_s11, 4  ;;  %s1880_s12 = int_to_ptr.vmem [resolvable:$false] %s1879_s12 }
  0x28   : > { %1738 = vmatpush3.bf16.msra.mxu1 %v621_v35  ;;  %1723 = vmatprep.mubr.msk.bf16.mxu1 %vm248_vm2, %v1857_v36  ;;  %v473_v62 = vsel %vm458_vm3, %v471_v53, %v472_v54  ;;  %v440_v0 = vunpack.c.h.bf16 %v422_v51  ;;  %v441_v1 = vunpack.c.l.bf16 %v425_v59  ;;  %v1861_v15 = vld [vmem:[%s2021_s7 + $0xa0] ss:$8 sps:$4 sm:$0xff]   ;;  %v906_v16 = vsel %vm261_vm1, %v1598_v11, 0  ;;  %v1863_v17 = vld [vmem:[%s2021_s7 + $0xb0] ss:$8 sps:$4 sm:$0xff]   ;;  %p1877_p13 = pnand %p1876_p12, %p2002_p5  ;;  %s1881_s13 = scalar_lea.vmem %s1880_s12, 256 }
  0x29   : > { %1730 = vmatmul.mubr.msk.bf16.vlgmr.msra.gmra.mxu0 %vm248_vm2, %v492_v57  ;;  %v476_v2 = vsel %vm458_vm3, %v474_v55, %v475_v58  ;;  %v477_v3 = vrot.slane %v438_v60, 1  ;;  %v478_v4 = vrot.slane %v439_v61, 1  ;;  %1805 = vmatprep.subr.msk.bf16.mxu1 %vm261_vm1, %v1598_v11  ;;  %v1582_v18 = vld [vmem:[%s2021_s7 + $0x90] ss:$8 sps:$4 sm:$0xff]   ;;  %v1583_v19 = vld [vmem:[%s2021_s7 + $0x94] sm:$0x1]  ;;  %p1882_p1 = scmp.lt.s32.totalorder %s1440_s6, %s1880_s12  ;;  %p1883_p2 = scmp.lt.s32.totalorder %s1881_s13, %s1875_s10 }
  0x2a   : > { %1748 = vmatpush3.bf16.msra.mxu0 %v732_v49  ;;  %v493_v6 = vpack.c.bf16 %v476_v2, %v473_v62  ;;  %v480_v7 = vrot.slane %v440_v0, 1  ;;  %v481_v8 = vrot.slane %v441_v1, 1  ;;  %v1585_v20 = vld [vmem:[%s2021_s7 + $0x9c] sm:$0x1]  ;;  %v823_v21 = vunpack.c.l.bf16 %v1582_v18  ;;  %v1862_v24 = vld [vmem:[%s2021_s7 + $0xe8] ss:$8 sps:$4 sm:$0xff]   ;;  %p1878_p0 = pneg %p1877_p13 }
  0x2b   : > { %v479_v9 = vsel %vm458_vm3, %v477_v3, %v478_v4  ;;  %1806 = vmatprep.subr.msk.bf16.mxu0 %vm261_vm1, %v1615_v12  ;;  %v824_v22 = vunpack.c.l.bf16 %v1583_v19  ;;  %v825_v23 = vunpack.c.h.bf16 %v1582_v18  ;;  %v1017_v25 = vsel %vm261_vm1, %v1615_v12, 0  ;;  %v1586_v27 = vld [vmem:[%s2021_s7 + $0xa0] ss:$8 sps:$4 sm:$0xff]   ;;  %v1587_v28 = vld [vmem:[%s2021_s7 + $0xa4] sm:$0x1]  ;;  %p1884_p3 = por %p1883_p2, %p1882_p1 }
  0x2c   : > { %1733 = vmatprep.mubr.msk.bf16.mxu0 %vm248_vm2, %v493_v6  ;;  %v482_v10 = vsel %vm458_vm3, %v480_v7, %v481_v8  ;;  %v826_v26 = vunpack.c.l.bf16 %v1585_v20  ;;  %v855_v29 = vrot.slane %v823_v21, 1  ;;  %v1589_v32 = vld [vmem:[%s2021_s7 + $0xac] sm:$0x1]  ;;  %v827_v33 = vunpack.c.l.bf16 %v1586_v27  ;;  %v1864_v38 = vld [vmem:[%s2021_s7 + $0xf8] ss:$8 sps:$4 sm:$0xff]  }
  0x2d   : > { %v494_v13 = vpack.c.bf16 %v482_v10, %v479_v9  ;;  %v856_v30 = vrot.slane %v824_v22, 1  ;;  %v858_v31 = vrot.slane %v825_v23, 1  ;;  %v828_v35 = vunpack.c.l.bf16 %v1587_v28  ;;  %v1632_v41 = vld [vmem:[%s2306_s1 + $0xe] sm:$0x3]  ;;  %v1865_v42 = vld [vmem:[%s2021_s7 + $0xc0] ss:$8 sps:$4 sm:$0xff]   ;;  %p1885_p4 = pnand %p1884_p3, %p1878_p0 }
  0x2e   : > { %v859_v34 = vrot.slane %v826_v26, 1  ;;  %v829_v36 = vunpack.c.h.bf16 %v1586_v27  ;;  %v830_v37 = vunpack.c.l.bf16 %v1589_v32  ;;  %v861_v40 = vrot.slane %v827_v33, 1  ;;  %v1653_v47 = vld [vmem:[%s2306_s1 + $0x10] sm:$0x3]  ;;  %v1591_v49 = vld [vmem:[%s2021_s7 + $0xb4] sm:$0x1] }
  0x2f   : > { %1724 = vmatmul.mubr.msk.bf16.gmra.mxu1 %vm248_vm2, %v1858_v63  ;;  %v857_v39 = vsel %vm458_vm3, %v855_v29, %v856_v30  ;;  %v862_v44 = vrot.slane %v828_v35, 1  ;;  %v1590_v48 = vld [vmem:[%s2021_s7 + $0xb0] ss:$8 sps:$4 sm:$0xff]   ;;  %v1593_v51 = vld [vmem:[%s2021_s7 + $0xbc] sm:$0x1]  ;;  %v832_v53 = vunpack.c.l.bf16 %v1591_v49  ;;  %v1302_v33 = vsel %vm261_vm1, %v1653_v47, 0 }
  0x30   : > { %1739 = vmatprep.mubr.msk.bf16.mxu1 %vm248_vm2, %v1859_v5  ;;  %v860_v43 = vsel %vm458_vm3, %v858_v31, %v859_v34  ;;  %v864_v45 = vrot.slane %v829_v36, 1  ;;  %v865_v46 = vrot.slane %v830_v37, 1  ;;  %v831_v52 = vunpack.c.l.bf16 %v1590_v48  ;;  %v1594_v56 = vld [vmem:[%s2021_s7 + $0xc0] ss:$8 sps:$4 sm:$0xff]   ;;  %v1595_v57 = vld [vmem:[%s2021_s7 + $0xc4] sm:$0x1] }
  0x31   : > { %1734 = vmatmul.mubr.msk.bf16.gmra.mxu0 %vm248_vm2, %v494_v13  ;;  %v887_v50 = vpack.c.bf16 %v860_v43, %v857_v39  ;;  %v833_v54 = vunpack.c.h.bf16 %v1590_v48  ;;  %v834_v55 = vunpack.c.l.bf16 %v1593_v51  ;;  %v868_v59 = vrot.slane %v832_v53, 1  ;;  %v1597_v60 = vld [vmem:[%s2021_s7 + $0xcc] sm:$0x1]  ;;  %v1866_v1 = vld [vmem:[%s2021_s7 + $0x108] ss:$8 sps:$4 sm:$0xff]  }
  0x32   : > { %1749 = vmatprep.mubr.msk.bf16.mxu0 %vm248_vm2, %v1860_v14  ;;  %v867_v58 = vrot.slane %v831_v52, 1  ;;  %v863_v61 = vsel %vm458_vm3, %v861_v40, %v862_v44  ;;  %v835_v0 = vunpack.c.l.bf16 %v1594_v56  ;;  %v866_v2 = vsel %vm458_vm3, %v864_v45, %v865_v46  ;;  %v1867_v6 = vld [vmem:[%s2021_s7 + $0x8] ss:$8 sps:$4 sm:$0xff]   ;;  %v1638_v10 = vld [vmem:[%s2021_s7 + $0xc] sm:$0x1] }
  0x33   : > { %v870_v62 = vrot.slane %v833_v54, 1  ;;  %v871_v63 = vrot.slane %v834_v55, 1  ;;  %v836_v3 = vunpack.c.l.bf16 %v1595_v57  ;;  %v837_v4 = vunpack.c.h.bf16 %v1594_v56  ;;  %v1637_v9 = vld [vmem:[%s2021_s7 + $0x8] ss:$8 sps:$4 sm:$0xff]   ;;  %v1640_v11 = vld [vmem:[%s2021_s7 + $0x14] sm:$0x1] }
  0x34   : > { %v838_v5 = vunpack.c.l.bf16 %v1597_v60  ;;  %v869_v7 = vsel %vm458_vm3, %v867_v58, %v868_v59  ;;  %v888_v12 = vpack.c.bf16 %v866_v2, %v863_v61  ;;  %v1128_v13 = vsel %vm261_vm1, %v1632_v41, 0  ;;  %v1868_v23 = vld [vmem:[%s2021_s7 + $0x18] ss:$8 sps:$4 sm:$0xff]   ;;  %v1642_v32 = vld [vmem:[%s2021_s7 + $0x1c] sm:$0x1] }
  0x35   : > { %v872_v8 = vsel %vm458_vm3, %v870_v62, %v871_v63  ;;  %v873_v14 = vrot.slane %v835_v0, 1  ;;  %v1219_v19 = vunpack.c.l.bf16 %v1637_v9  ;;  %v1220_v20 = vunpack.c.l.bf16 %v1638_v10  ;;  %v1641_v27 = vld [vmem:[%s2021_s7 + $0x18] ss:$8 sps:$4 sm:$0xff]   ;;  %v1644_v34 = vld [vmem:[%s2021_s7 + $0x24] sm:$0x1] }
  0x36   : > { %v877_v18 = vrot.slane %v838_v5, 1  ;;  %v1221_v21 = vunpack.c.h.bf16 %v1637_v9  ;;  %v1222_v22 = vunpack.c.l.bf16 %v1640_v11  ;;  %v1645_v36 = vld [vmem:[%s2021_s7 + $0x28] ss:$8 sps:$4 sm:$0xff]   ;;  %v1646_v37 = vld [vmem:[%s2021_s7 + $0x2c] sm:$0x1]  ;;  %v1223_v40 = vunpack.c.l.bf16 %v1641_v27 }
  0x37   : > { %1740 = vmatmul.mubr.msk.bf16.vlgmr.msra.gmra.mxu1 %vm248_vm2, %v1861_v15  ;;  %v889_v15 = vpack.c.bf16 %v872_v8, %v869_v7  ;;  %v1251_v28 = vrot.slane %v1219_v19, 1  ;;  %v1252_v29 = vrot.slane %v1220_v20, 1  ;;  %v1871_v39 = vld [vmem:[%s2021_s7 + $0x50] ss:$8 sps:$4 sm:$0xff]   ;;  %v1225_v44 = vunpack.c.h.bf16 %v1641_v27  ;;  %v1650_v57 = vld [vmem:[%s2021_s7 + $0x3c] sm:$0x1] }
  0x38   : > { %1758 = vmatpush3.bf16.msra.mxu1 %v906_v16  ;;  %1743 = vmatprep.mubr.msk.bf16.mxu1 %vm248_vm2, %v1863_v17  ;;  %v874_v16 = vrot.slane %v836_v3, 1  ;;  %v876_v17 = vrot.slane %v837_v4, 1  ;;  %v1254_v30 = vrot.slane %v1221_v21, 1  ;;  %v1255_v31 = vrot.slane %v1222_v22, 1  ;;  %v1649_v56 = vld [vmem:[%s2021_s7 + $0x38] ss:$8 sps:$4 sm:$0xff]  }
  0x39   : > { %1807 = vmatprep.subr.msk.bf16.mxu1 %vm261_vm1, %v1632_v41  ;;  %1750 = vmatmul.mubr.msk.bf16.vlgmr.msra.gmra.mxu0 %vm248_vm2, %v1862_v24  ;;  %v1869_v24 = vld [vmem:[%s2021_s7 + $0x28] ss:$8 sps:$4 sm:$0xff]   ;;  %v1224_v41 = vunpack.c.l.bf16 %v1642_v32  ;;  %v1226_v45 = vunpack.c.l.bf16 %v1644_v34  ;;  %v1227_v46 = vunpack.c.l.bf16 %v1645_v36  ;;  %v1229_v48 = vunpack.c.h.bf16 %v1645_v36  ;;  %v1652_v62 = vld [vmem:[%s2021_s7 + $0x44] sm:$0x1] }
  0x3a   : > { %1768 = vmatpush3.bf16.msra.mxu0 %v1017_v25  ;;  %1753 = vmatprep.mubr.msk.bf16.mxu0 %vm248_vm2, %v1864_v38  ;;  %v875_v25 = vsel %vm458_vm3, %v873_v14, %v874_v16  ;;  %v878_v26 = vsel %vm458_vm3, %v876_v17, %v877_v18  ;;  %v1648_v38 = vld [vmem:[%s2021_s7 + $0x34] sm:$0x1]  ;;  %v1256_v43 = vsel %vm458_vm3, %v1254_v30, %v1255_v31  ;;  %v1257_v51 = vrot.slane %v1223_v40, 1  ;;  %v1872_v63 = vld [vmem:[%s2021_s7 + $0x60] ss:$8 sps:$4 sm:$0xff]  }
  0x3b   : > { %1808 = vmatprep.subr.msk.bf16.mxu0 %vm261_vm1, %v1653_v47  ;;  %v890_v35 = vpack.c.bf16 %v878_v26, %v875_v25  ;;  %v1228_v47 = vunpack.c.l.bf16 %v1646_v37  ;;  %v1230_v49 = vunpack.c.l.bf16 %v1648_v38  ;;  %v1258_v52 = vrot.slane %v1224_v41, 1 }
  0x3c   : > { %v1260_v54 = vrot.slane %v1225_v44, 1  ;;  %v1261_v55 = vrot.slane %v1226_v45, 1  ;;  %v1263_v58 = vrot.slane %v1227_v46, 1  ;;  %v1266_v60 = vrot.slane %v1229_v48, 1 }
  0x3d   : > { %v1264_v59 = vrot.slane %v1228_v47, 1  ;;  %v1267_v61 = vrot.slane %v1230_v49, 1  ;;  %v1259_v0 = vsel %vm458_vm3, %v1257_v51, %v1258_v52  ;;  %v1231_v2 = vunpack.c.l.bf16 %v1649_v56 }
  0x3e   : > { %v1262_v3 = vsel %vm458_vm3, %v1260_v54, %v1261_v55  ;;  %v1232_v4 = vunpack.c.l.bf16 %v1650_v57  ;;  %v1233_v5 = vunpack.c.h.bf16 %v1649_v56 }
  0x3f   : > { %1744 = vmatmul.mubr.msk.bf16.gmra.mxu1 %vm248_vm2, %v1865_v42  ;;  %v1253_v42 = vsel %vm458_vm3, %v1251_v28, %v1252_v29  ;;  %v1265_v7 = vsel %vm458_vm3, %v1263_v58, %v1264_v59  ;;  %v1268_v8 = vsel %vm458_vm3, %v1266_v60, %v1267_v61  ;;  %v1284_v9 = vpack.c.bf16 %v1262_v3, %v1259_v0 }
  0x40   : > { %1759 = vmatprep.mubr.msk.bf16.mxu1 %vm248_vm2, %v887_v50  ;;  %v1870_v50 = vld [vmem:[%s2021_s7 + $0x38] ss:$8 sps:$4 sm:$0xff]   ;;  %v1283_v53 = vpack.c.bf16 %v1256_v43, %v1253_v42  ;;  %v1269_v10 = vrot.slane %v1231_v2, 1  ;;  %v1285_v11 = vpack.c.bf16 %v1268_v8, %v1265_v7 }
  0x41   : > { %1754 = vmatmul.mubr.msk.bf16.gmra.mxu0 %vm248_vm2, %v1866_v1  ;;  %v1873_v1 = vld [vmem:[%s2021_s7 + $0x70] ss:$8 sps:$4 sm:$0xff]  }
  0x42   : > { %1769 = vmatprep.mubr.msk.bf16.mxu0 %vm248_vm2, %v1867_v6  ;;  %v1234_v6 = vunpack.c.l.bf16 %v1652_v62 }
  0x44   : > { %v1273_v14 = vrot.slane %v1234_v6, 1 }
  0x47   : > { %1760 = vmatmul.mubr.msk.bf16.vlgmr.msra.gmra.mxu1 %vm248_vm2, %v888_v12  ;;  %v1270_v12 = vrot.slane %v1232_v4, 1 }
  0x48   : > { %1778 = vmatpush3.bf16.msra.mxu1 %v1128_v13  ;;  %1763 = vmatprep.mubr.msk.bf16.mxu1 %vm248_vm2, %v889_v15  ;;  %v1272_v13 = vrot.slane %v1233_v5, 1  ;;  %v1874_v15 = vld [vmem:[%s2021_s7 + $0x80] ss:$8 sps:$4 sm:$0xff]   ;;  %s1659_s7 = sshll.u32 %s1985_s19, 7 }
  0x49   : > { %1770 = vmatmul.mubr.msk.bf16.vlgmr.msra.gmra.mxu0 %vm248_vm2, %v1868_v23  ;;  %v1271_v16 = vsel %vm458_vm3, %v1269_v10, %v1270_v12  ;;  %s1437_s5 = scalar_lea.hbm %s2307_s2, %s1659_s7 }
  0x4a   : > { %1788 = vmatpush3.bf16.msra.mxu0 %v1302_v33  ;;  %1773 = vmatprep.mubr.msk.bf16.mxu0 %vm248_vm2, %v1869_v24  ;;  %v1274_v17 = vsel %vm458_vm3, %v1272_v13, %v1273_v14 }
  0x4b   : > { %v1286_v18 = vpack.c.bf16 %v1274_v17, %v1271_v16 }
  0x4f   : > { %1764 = vmatmul.mubr.msk.bf16.gmra.mxu1 %vm248_vm2, %v890_v35 }
  0x50   : > { %1779 = vmatprep.mubr.msk.bf16.mxu1 %vm248_vm2, %v1871_v39 }
  0x51   : > { %1774 = vmatmul.mubr.msk.bf16.gmra.mxu0 %vm248_vm2, %v1870_v50 }
  0x52   : > { %1789 = vmatprep.mubr.msk.bf16.mxu0 %vm248_vm2, %v1283_v53 }
  0x57   : > { %1780 = vmatmul.mubr.msk.bf16.vlgmr.msra.gmra.mxu1 %vm248_vm2, %v1872_v63 }
  0x58   : > { %1783 = vmatprep.mubr.msk.bf16.mxu1 %vm248_vm2, %v1873_v1 }
  0x59   : > { %1790 = vmatmul.mubr.msk.bf16.vlgmr.msra.gmra.mxu0 %vm248_vm2, %v1284_v9 }
  0x5a   : > { %1793 = vmatprep.mubr.msk.bf16.mxu0 %vm248_vm2, %v1285_v11 }
  0x5f   : > { %1784 = vmatmul.mubr.msk.bf16.gmra.mxu1 %vm248_vm2, %v1874_v15 }
  0x61   : > { %1794 = vmatmul.mubr.msk.bf16.gmra.mxu0 %vm248_vm2, %v1286_v18 }
  0xdf   : > { %v1711_v19 = vpop.f32.mrf.mxu0  ;;  %v2197_v20 = vpop.f32.mrf.mxu1 }
  0xe1   : > { %v299_v21 = vpop.f32.mrf.mxu0  ;;  %v2199_v22 = vpop.f32.mrf.mxu1 }
  0xe3   : > { %v2201_v23 = vpop.f32.mrf.mxu1  ;;  %v1712_v24 = vpop.f32.mrf.mxu0 }
  0xe5   : > { %v2203_v25 = vpop.f32.mrf.mxu1  ;;  %v302_v27 = vpop.f32.mrf.mxu0 }
  0xe7   : > { %v1721_v26 = vpop.f32.mrf.mxu1 }
  0xe8   : > { %v388_v7 = vadd.f32 %v1721_v26, %v1711_v19 }
  0xe9   : > { %v379_v28 = vpop.f32.mrf.mxu1  ;;  %v1731_v30 = vpop.f32.mrf.mxu0 }
  0xea   : > { %v380_v59 = vadd.f32 %v379_v28, %v299_v21  ;;  %v579_v15 = vadd.f32 %v1731_v30, %v388_v7 }
  0xeb   : > { %v1722_v29 = vpop.f32.mrf.mxu1  ;;  %v546_v32 = vpop.f32.mrf.mxu0 }
  0xec   : > { %v577_v0 = vadd.f32 %v546_v32, %v380_v59  ;;  %v391_v16 = vadd.f32 %v1722_v29, %v1712_v24 }
  0xed   : > { %v382_v31 = vpop.f32.mrf.mxu1  ;;  %v1732_v34 = vpop.f32.mrf.mxu0 }
  0xee   : > { %v383_v1 = vadd.f32 %v382_v31, %v302_v27  ;;  %v580_v19 = vadd.f32 %v1732_v34, %v391_v16 }
  0xef   : > { %v2205_v33 = vpop.f32.mrf.mxu1  ;;  %v549_v36 = vpop.f32.mrf.mxu0 }
  0xf0   : > { %v578_v8 = vadd.f32 %v549_v36, %v383_v1 }
  0xf1   : > { %v395_v35 = vpop.f32.mrf.mxu1  ;;  %v2209_v38 = vpop.f32.mrf.mxu0 }
  0xf2   : > { %v396_v26 = vadd.f32 %v395_v35, %v2199_v22 }
  0xf3   : > { %v2207_v37 = vpop.f32.mrf.mxu1  ;;  %v562_v40 = vpop.f32.mrf.mxu0 }
  0xf4   : > { %v581_v29 = vadd.f32 %v562_v40, %v396_v26  ;;  %v407_v16 = vadd.f32 %v2207_v37, %v2201_v23 }
  0xf5   : > { %v398_v39 = vpop.f32.mrf.mxu1  ;;  %v2211_v42 = vpop.f32.mrf.mxu0 }
  0xf7   : > { %v1741_v41 = vpop.f32.mrf.mxu1  ;;  %v2213_v44 = vpop.f32.mrf.mxu0 }
  0xf8   : > { %v690_v27 = vadd.f32 %v1741_v41, %v579_v15 }
  0xf9   : > { %v657_v43 = vpop.f32.mrf.mxu1  ;;  %v1751_v46 = vpop.f32.mrf.mxu0 }
  0xfa   : > { %v688_v4 = vadd.f32 %v657_v43, %v577_v0  ;;  %v801_v59 = vadd.f32 %v1751_v46, %v690_v27  ;;  %v404_v46 = vadd.f32 %v2205_v33, %v2197_v20  ;;  %v584_v27 = vadd.f32 %v2211_v42, %v407_v16 }
  0xfb   : > { %v1742_v45 = vpop.f32.mrf.mxu1  ;;  %v768_v48 = vpop.f32.mrf.mxu0 }
  0xfc   : > { %v799_v11 = vadd.f32 %v768_v48, %v688_v4  ;;  %v691_v0 = vadd.f32 %v1742_v45, %v580_v19  ;;  %v583_v15 = vadd.f32 %v2209_v38, %v404_v46 }
  0xfd   : > { %v660_v47 = vpop.f32.mrf.mxu1  ;;  %v1752_v50 = vpop.f32.mrf.mxu0 }
  0xfe   : > { %v689_v12 = vadd.f32 %v660_v47, %v578_v8  ;;  %v802_v8 = vadd.f32 %v1752_v50, %v691_v0 }
  0xff   : > { %v2215_v49 = vpop.f32.mrf.mxu1  ;;  %v771_v52 = vpop.f32.mrf.mxu0 }
 0x100   : > { %v800_v28 = vadd.f32 %v771_v52, %v689_v12  ;;  %v694_v33 = vadd.f32 %v2215_v49, %v583_v15 }
 0x101   : > { %v673_v51 = vpop.f32.mrf.mxu1  ;;  %v2219_v54 = vpop.f32.mrf.mxu0 }
 0x102   : > { %v692_v34 = vadd.f32 %v673_v51, %v581_v29  ;;  %v805_v38 = vadd.f32 %v2219_v54, %v694_v33 }
 0x103   : > { %v2217_v53 = vpop.f32.mrf.mxu1  ;;  %v784_v56 = vpop.f32.mrf.mxu0 }
 0x104   : > { %v695_v23 = vadd.f32 %v2217_v53, %v584_v27 }
 0x105   : > { %v2221_v55 = vpop.f32.mrf.mxu1  ;;  %v2223_v58 = vpop.f32.mrf.mxu0 }
 0x106   : > { %v806_v26 = vadd.f32 %v2223_v58, %v695_v23 }
 0x107   : > { %v1761_v57 = vpop.f32.mrf.mxu1  ;;  %v2225_v61 = vpop.f32.mrf.mxu0 }
 0x108   : > { %v975_v41 = vadd.f32 %v1761_v57, %v801_v59 }
 0x109   : > { %v942_v60 = vpop.f32.mrf.mxu1  ;;  %v1771_v63 = vpop.f32.mrf.mxu0 }
 0x10a   : > { %v973_v17 = vadd.f32 %v942_v60, %v799_v11  ;;  %v399_v60 = vadd.f32 %v398_v39, %v2203_v25  ;;  %v803_v25 = vadd.f32 %v784_v56, %v692_v34 }
 0x10b   : > { %v1762_v62 = vpop.f32.mrf.mxu1  ;;  %v1053_v3 = vpop.f32.mrf.mxu0 }
 0x10c   : > { %v1084_v36 = vadd.f32 %v1053_v3, %v973_v17  ;;  %v582_v45 = vadd.f32 %v2213_v44, %v399_v60  ;;  %v1086_v3 = vadd.f32 %v1771_v63, %v975_v41  ;;  %v976_v12 = vadd.f32 %v1762_v62, %v802_v8 }
 0x10d   : > { %v945_v2 = vpop.f32.mrf.mxu1  ;;  %v1772_v6 = vpop.f32.mrf.mxu0 }
 0x10e   : > { %v974_v43 = vadd.f32 %v945_v2, %v800_v28  ;;  %v693_v39 = vadd.f32 %v2221_v55, %v582_v45  ;;  %v1087_v17 = vadd.f32 %v1772_v6, %v976_v12 }
 0x10f   : > { %v2227_v5 = vpop.f32.mrf.mxu1  ;;  %v1056_v10 = vpop.f32.mrf.mxu0 }
 0x110   : > { %v1085_v52 = vadd.f32 %v1056_v10, %v974_v43  ;;  %v804_v44 = vadd.f32 %v2225_v61, %v693_v39  ;;  %v979_v49 = vadd.f32 %v2227_v5, %v805_v38 }
 0x111   : > { %v958_v9 = vpop.f32.mrf.mxu1  ;;  %v2231_v14 = vpop.f32.mrf.mxu0 }
 0x112   : > { %v977_v20 = vadd.f32 %v958_v9, %v803_v25 }
 0x113   : > { %v2229_v13 = vpop.f32.mrf.mxu1  ;;  %v1069_v21 = vpop.f32.mrf.mxu0 }
 0x114   : > { %v1088_v28 = vadd.f32 %v1069_v21, %v977_v20  ;;  %v980_v54 = vadd.f32 %v2229_v13, %v806_v26 }
 0x115   : > { %v961_v18 = vpop.f32.mrf.mxu1  ;;  %v2233_v32 = vpop.f32.mrf.mxu0 }
 0x117   : > { %v1781_v31 = vpop.f32.mrf.mxu1  ;;  %v1072_v48 = vpop.f32.mrf.mxu0 }
 0x118   : > { %v1197_v57 = vadd.f32 %v1781_v31, %v1086_v3  ;;  %v978_v31 = vadd.f32 %v961_v18, %v804_v44  ;;  %v1090_v18 = vadd.f32 %v2231_v14, %v979_v49 }
 0x119   : > { %v1164_v47 = vpop.f32.mrf.mxu1  ;;  %v1791_v24 = vpop.f32.mrf.mxu0 }
 0x11a   : > { %v1195_v1 = vadd.f32 %v1164_v47, %v1084_v36  ;;  %v1371_v62 = vadd.f32 %v1791_v24, %v1197_v57  ;;  %v1089_v61 = vadd.f32 %v1072_v48, %v978_v31  ;;  %v1091_v47 = vadd.f32 %v2233_v32, %v980_v54 }
 0x11b   : > { %v1782_v30 = vpop.f32.mrf.mxu1  ;;  %v1338_v7 = vpop.f32.mrf.mxu0 }
 0x11c   : > { %v1369_v22 = vadd.f32 %v1338_v7, %v1195_v1  ;;  %v1198_v56 = vadd.f32 %v1782_v30, %v1087_v17 }
 0x11d   : > { %v1167_v4 = vpop.f32.mrf.mxu1  ;;  %v1792_v35 = vpop.f32.mrf.mxu0 }
 0x11e   : > { %v1196_v11 = vadd.f32 %v1167_v4, %v1085_v52  ;;  %1377 = vxpose.xlu0.b32.start [1/8] (short) (narrow) %v1369_v22, 8  ;;  %v1372_v37 = vadd.f32 %v1792_v35, %v1198_v56 }
 0x11f   : > { %v1785_v2 = vpop.f32.mrf.mxu1  ;;  %v1341_v40 = vpop.f32.mrf.mxu0 }
 0x120   : > { %v1370_v10 = vadd.f32 %v1341_v40, %v1196_v11  ;;  %v1201_v53 = vadd.f32 %v1785_v2, %v1090_v18 }
 0x121   : > { %v1180_v50 = vpop.f32.mrf.mxu1  ;;  %v1795_v51 = vpop.f32.mrf.mxu0 }
 0x122   : > { %1378 = vxpose.xlu0.b32.cont [2/8] (short) (narrow) %v1370_v10, 8  ;;  %v1199_v6 = vadd.f32 %v1180_v50, %v1088_v28  ;;  %v1375_v5 = vadd.f32 %v1795_v51, %v1201_v53 }
 0x123   : > { %v1786_v63 = vpop.f32.mrf.mxu1  ;;  %v1354_v55 = vpop.f32.mrf.mxu0 }
 0x124   : > { %v1373_v36 = vadd.f32 %v1354_v55, %v1199_v6  ;;  %v1202_v48 = vadd.f32 %v1786_v63, %v1091_v47 }
 0x125   : > { %v1183_v9 = vpop.f32.mrf.mxu1  ;;  %v1796_v19 = vpop.f32.mrf.mxu0 }
 0x126   : > { %1379 = vxpose.xlu0.b32.cont [3/8] (short) (narrow) %v1371_v62, 8  ;;  %v1200_v43 = vadd.f32 %v1183_v9, %v1089_v61  ;;  %v1376_v58 = vadd.f32 %v1796_v19, %v1202_v48 }
 0x127   : > { %v1357_v42 = vpop.f32.mrf.mxu0 }
 0x128   : > { %v1374_v21 = vadd.f32 %v1357_v42, %v1200_v43 }
 0x12a   : > { %1380 = vxpose.xlu0.b32.cont [4/8] (short) (narrow) %v1372_v37, 8 }
 0x12e   : > { %1381 = vxpose.xlu0.b32.cont [5/8] (short) (narrow) %v1373_v36, 8 }
 0x132   : > { %1382 = vxpose.xlu0.b32.cont [6/8] (short) (narrow) %v1374_v21, 8 }
 0x136   : > { %1383 = vxpose.xlu0.b32.cont [7/8] (short) (narrow) %v1375_v5, 8 }
 0x13a   : > { %1384 = vxpose.xlu0.b32.end [8/8] (short) (narrow) %v1376_v58, 8 }
 0x19a   : > { %v1393_v59 = vpop.trf.xlu0 }
 0x19b   : > { %1410 = vst.msk [vmem:[%s184_s8] sm:$0xff] %vm1409_vm4, %v1393_v59  ;;  %v1419_v13 = vmul.f32 %v1393_v59, %v1393_v59  ;;  %v1412_v14 = vsel %vm1409_vm4, %v1393_v59, 0.0 }
 0x19c   : > { %1413 = vadd.xlane.f32.xlu1 %v1412_v14 }
 0x19d   : > { %v1420_v0 = vsel %vm1409_vm4, %v1419_v13, 0.0 }
 0x1a0   : > { %1421 = vadd.xlane.f32.xlu1 %v1420_v0 }
 0x1a1   : > { %1888 = shalt.err (!%p1885_p4)
}
 0x1a2   : > { %s1889_s19 = scalar_lea.hbm %s1437_s5, 128  ;;  %s1893_s8 = scalar_lea.hbm %s2307_s2, 256 }
 0x1a3   : > { %p1890_p7 = scmp.ne.s32.totalorder %s1437_s5, %s1889_s19  ;;  %p1894_p10 = scmp.lt.s32.totalorder %s1437_s5, %s2307_s2 }
 0x1a4   : > { %p1895_p11 = scmp.lt.s32.totalorder %s1893_s8, %s1889_s19 }
 0x1a5   : > { %p1891_p8 = pnand %p1890_p7, %p2002_p5 }
 0x1a6   : > { %p1896_p12 = por %p1895_p11, %p1894_p10 }
 0x1a7   : > { %p1892_p9 = pneg %p1891_p8 }
 0x1a9   : > { %p1897_p13 = pnand %p1896_p12, %p1892_p9 }
 0x1ab   : > { %1900 = shalt.err (!%p1897_p13)
}
 0x1ac   : > { %1810 = dma.vmem_to_hbm [thread:$0]  (%p2002_p5), %s1440_s6, 128, %s1437_s5, %s1426_s9   ;;  %v1411_v32 = vld [vmem:[%s2308_s3] sm:$0xff]  ;;  %vm1416_vm5 = vcmask 7168  }
 0x1ad   : > { %v1418_v24 = vld [vmem:[%s2309_s4] sm:$0xff] }
 0x225   : > { %v1414_v1 = vpop.xlane.xlu1 %1413 }
 0x226   : > { %v1415_v30 = vadd.f32 %v1414_v1, %v1411_v32 }
 0x228   : > { %1417 = vst.msk [vmem:[%s2308_s3] sm:$0xff] %vm1416_vm5, %v1415_v30 }
 0x229   : > { %v1422_v29 = vpop.xlane.xlu1 %1421 }
 0x22a   : > { %v1423_v60 = vadd.f32 %v1422_v29, %v1418_v24 }
 0x22c   : > { %1424 = vst.msk [vmem:[%s2309_s4] sm:$0xff] %vm1416_vm5, %v1423_v60 }
 0x22d PF: > { %p1816_p5 = scmp.ge.s32.totalorder %s1935_s18, 2  ;;  %s1463_s5 = sand.u32 1, %s1923_s15  }
 0x22e   : > { %s1464_s6 = scalar_lea.sflag [#allocation3], %s1463_s5 }
 0x22f   : > { %p1813_p0 = pnand %p1816_p5, %p2006_p6 }
 0x231   : > { %p1814_p1 = pneg %p1813_p0 }
 0x233   : > { %1918 = dma.done.wait (%p1814_p1), %s1464_s6, 128  }
 0x234   : > { %1920 = vsyncadd (%p1814_p1), %s1464_s6, 4294967168  ;;  %p15_p2 = scmp.ge.s32.totalorder %s1989_s21, 4   ;;  %s2312_s15 = smov %s1927_s16 }
 0x235   : > { %s2313_s16 = smov %s1931_s17  ;;  %s2314_s17 = smov %s2000_s24 }
 0x236   : > { %s2315_s18 = smov %s1989_s21  ;;  %17 = sbr.rel (!%p15_p2) target bundleno = 3 (0x3), region = 96 }
 0x23b   :  { %1469 = vsyncpa [#allocation3], 1 }
 0x23c   :  { %1471 = vsyncpa [#allocation3 + $0x1], 1 }

</bundles_post_ra>
